<compile_context>
chip_gen: v5e
topology: v5e:2x2
jax: 0.10.0
libtpu: 0.0.40
codegen_flags: <defaults>
</compile_context>

<pallas_src>
import functools

import jax
import jax.numpy as jnp
from jax.experimental import pallas as pl
from jax.experimental.pallas import tpu as pltpu


def _round_up(x, m):
    return (x + m - 1) // m * m


def maxout_kernel(x_ref, w_ref, b_ref, o_ref, *, pieces, kp):
    # x_ref: (tm, in_units)            batch tile
    # w_ref: (in_units, pieces * kp)   fused, lane-dense weight
    # b_ref: (1, pieces * kp)          fused, lane-dense bias
    # o_ref: (tm, kp)                  lane-dense output tile
    # Single MXU push with N = pieces*kp keeps the systolic array full; the
    # maxout reduction is then VPU maximums over lane-aligned slices.
    y = jnp.dot(x_ref[...], w_ref[...], preferred_element_type=jnp.float32)
    y = y + b_ref[...]                       # one lane-dense bias add per tile
    acc = y[:, 0:kp]
    for p in range(1, pieces):               # pieces is small & static -> unrolled
        acc = jnp.maximum(acc, y[:, p * kp:(p + 1) * kp])
    o_ref[...] = acc.astype(o_ref.dtype)


def maxout_forward(x, weight, bias, out_units, pieces, *, tm=128):
    """Maxout forward (eval mode).

    x: (B, in_units); weight: (out_units*pieces, in_units) [PyTorch nn.Linear
    layout]; bias: (out_units*pieces,). Returns (B, out_units).
    """
    B, in_units = x.shape
    K = out_units
    kp = _round_up(K, 128)        # lane-dense output width
    pk = pieces * kp

    # Big batch tile for MXU utilisation, clamped so tiny batches don't pad 8x.
    tm = min(tm, _round_up(B, 8))
    b_rows = _round_up(B, tm)
    if b_rows != B:
        x = jnp.pad(x, ((0, b_rows - B), (0, 0)))

    # PyTorch: y = x @ weight.T + bias; view(-1, K, pieces).max(-1)
    # feature f = o*pieces + p  ->  fused column p*kp + o.
    w3 = weight.reshape(K, pieces, in_units).transpose(2, 1, 0)            # (in, P, K)
    w_fused = jnp.pad(w3, ((0, 0), (0, 0), (0, kp - K))).reshape(in_units, pk)
    b_fused = jnp.pad(bias.reshape(K, pieces).T, ((0, 0), (0, kp - K))).reshape(1, pk)

    grid = (b_rows // tm,)

    # Rough VMEM budget (double-buffered blocks) with headroom, capped so it is
    # valid on v7x's 64 MiB physical VMEM.
    itemsize = jnp.dtype(x.dtype).itemsize
    vmem_bytes = 2 * itemsize * (tm * in_units + in_units * pk + pk + tm * kp)
    vmem_limit = int(min(max(2 * vmem_bytes, 32 * 1024 * 1024), 60 * 1024 * 1024))

    out = pl.pallas_call(
        functools.partial(maxout_kernel, pieces=pieces, kp=kp),
        out_shape=jax.ShapeDtypeStruct((b_rows, kp), x.dtype),
        grid_spec=pltpu.PrefetchScalarGridSpec(
            num_scalar_prefetch=0,
            grid=grid,
            in_specs=[
                pl.BlockSpec((tm, in_units), lambda i: (i, 0)),
                pl.BlockSpec((in_units, pk), lambda i: (0, 0)),
                pl.BlockSpec((1, pk), lambda i: (0, 0)),
            ],
            out_specs=pl.BlockSpec((tm, kp), lambda i: (i, 0)),
        ),
        compiler_params=pltpu.CompilerParams(
            dimension_semantics=("parallel",),
            vmem_limit_bytes=vmem_limit,
        ),
    )(x, w_fused, b_fused)
    return out[:B, :K]


if __name__ == "__main__":
    # Small shapes consistent with the module's forward.
    batch, in_units, out_units, pieces = 16, 32, 16, 4

    key = jax.random.PRNGKey(0)
    kx, kw = jax.random.split(key)
    x = jax.random.normal(kx, (batch, in_units), dtype=jnp.float32)
    # nn.init.normal_(weight, 0, 0.0001); nn.init.constant_(bias, 0)
    weight = 1e-4 * jax.random.normal(kw, (out_units * pieces, in_units), dtype=jnp.float32)
    bias = jnp.zeros((out_units * pieces,), dtype=jnp.float32)

    out = maxout_forward(x, weight, bias, out_units, pieces)
    out = jax.block_until_ready(out)

    # Pure-JAX reference of the same semantics (eval-mode dropout = identity).
    y_ref = x @ weight.T + bias
    ref = y_ref.reshape(-1, out_units, pieces).max(-1)
    assert out.shape == (batch, out_units)
    assert jnp.allclose(out, ref, atol=1e-6, rtol=1e-5), "mismatch vs reference"

    print("KERNEL_OK")
</pallas_src>

<mosaic_0001>
module attributes {stable_mosaic.version = 11 : i64} {
  func.func @maxout_kernel(%arg0: i32, %arg1: memref<16x32xf32, #tpu.memory_space<vmem>>, %arg2: memref<32x512xf32, #tpu.memory_space<vmem>>, %arg3: memref<1x512xf32, #tpu.memory_space<vmem>>, %arg4: memref<16x128xf32, #tpu.memory_space<vmem>>) attributes {dimension_semantics = [#tpu.dimension_semantics<parallel>], iteration_bounds = array<i64: 1>, scalar_prefetch = 0 : i64, scratch_operands = 0 : i64, tpu.core_type = #tpu.core_type<tc>, window_params = [{transform_indices = @transform_0, window_bounds = array<i64: 16, 32>}, {pipeline_mode = #tpu.pipeline_mode<synchronous>, transform_indices = @transform_1, window_bounds = array<i64: 32, 512>}, {pipeline_mode = #tpu.pipeline_mode<synchronous>, transform_indices = @transform_2, window_bounds = array<i64: 1, 512>}, {transform_indices = @transform_3, window_bounds = array<i64: 16, 128>}]} {
    %c0 = arith.constant 0 : index
    %c0_0 = arith.constant 0 : index
    %0 = vector.load %arg1[%c0, %c0_0] : memref<16x32xf32, #tpu.memory_space<vmem>>, vector<16x32xf32>
    %c0_1 = arith.constant 0 : index
    %c0_2 = arith.constant 0 : index
    %1 = vector.load %arg2[%c0_1, %c0_2] : memref<32x512xf32, #tpu.memory_space<vmem>>, vector<32x512xf32>
    %cst = arith.constant dense<0.000000e+00> : vector<16x512xf32>
    %2 = tpu.matmul %0, %1, %cst {dimension_numbers = #tpu.dot_dimension_numbers<[1], [0], [0], [1], [0, 0, 1, 1], [], []>} : vector<16x32xf32>, vector<32x512xf32>, vector<16x512xf32> -> vector<16x512xf32>
    %c0_3 = arith.constant 0 : index
    %c0_4 = arith.constant 0 : index
    %3 = vector.load %arg3[%c0_3, %c0_4] : memref<1x512xf32, #tpu.memory_space<vmem>>, vector<1x512xf32>
    %4 = vector.broadcast %3 : vector<1x512xf32> to vector<16x512xf32>
    %5 = arith.addf %2, %4 : vector<16x512xf32>
    %6 = vector.extract_strided_slice %5 {offsets = [0, 0], sizes = [16, 128], strides = [1, 1]} : vector<16x512xf32> to vector<16x128xf32>
    %7 = vector.extract_strided_slice %5 {offsets = [0, 128], sizes = [16, 128], strides = [1, 1]} : vector<16x512xf32> to vector<16x128xf32>
    %8 = arith.maximumf %6, %7 : vector<16x128xf32>
    %9 = vector.extract_strided_slice %5 {offsets = [0, 256], sizes = [16, 128], strides = [1, 1]} : vector<16x512xf32> to vector<16x128xf32>
    %10 = arith.maximumf %8, %9 : vector<16x128xf32>
    %11 = vector.extract_strided_slice %5 {offsets = [0, 384], sizes = [16, 128], strides = [1, 1]} : vector<16x512xf32> to vector<16x128xf32>
    %12 = arith.maximumf %10, %11 : vector<16x128xf32>
    %c0_5 = arith.constant 0 : index
    %c0_6 = arith.constant 0 : index
    %13 = vector.load %arg4[%c0_5, %c0_6] : memref<16x128xf32, #tpu.memory_space<vmem>>, vector<16x128xf32>
    tpu.vector_store %arg4[%c0_5, %c0_6], %12 {strides = array<i32>} : memref<16x128xf32, #tpu.memory_space<vmem>>, vector<16x128xf32>,
    return
  }
  func.func @transform_0(%arg0: i32) -> (i32, i32) {
    %c0_i32 = arith.constant 0 : i32
    %c0_i32_0 = arith.constant 0 : i32
    return %arg0, %c0_i32 : i32, i32
  }
  func.func @transform_1(%arg0: i32) -> (i32, i32) {
    %c0_i32 = arith.constant 0 : i32
    %c0_i32_0 = arith.constant 0 : i32
    %c0_i32_1 = arith.constant 0 : i32
    return %c0_i32, %c0_i32_0 : i32, i32
  }
  func.func @transform_2(%arg0: i32) -> (i32, i32) {
    %c0_i32 = arith.constant 0 : i32
    %c0_i32_0 = arith.constant 0 : i32
    %c0_i32_1 = arith.constant 0 : i32
    return %c0_i32, %c0_i32_0 : i32, i32
  }
  func.func @transform_3(%arg0: i32) -> (i32, i32) {
    %c0_i32 = arith.constant 0 : i32
    %c0_i32_0 = arith.constant 0 : i32
    return %arg0, %c0_i32 : i32, i32
  }
}

</mosaic_0001>

<bundles_post_ra>
// kernel: tpu_custom_call.1
= control target key start
LH: loop header
LB: loop body
LE: loop exit
PB: predicated region body
PF: predicated region fallthrough
CT: control target
= control target key end

     0   :  { %8 = vsyncpa [#allocation3], 0  ;;  %s387_s0 = inlined_call_operand.hbm [shape: f32[16,32], index: 0, kind: input, shape index: {}]   ;;  %s388_s1 = inlined_call_operand.hbm [shape: f32[32,512], index: 1, kind: input, shape index: {}]   ;;  %s389_s2 = inlined_call_operand.hbm [shape: f32[1,512], index: 2, kind: input, shape index: {}]   ;;  %s390_s3 = inlined_call_operand.hbm [shape: f32[16,128], index: 3, kind: output, shape index: {}]  }
   0x1   :  { %9 = vsyncpa [#allocation6], 0  ;;  %s28_s14 = sshll.u32 %s388_s1, 4  ;;  %s29_s14 = int_to_ptr.hbm [resolvable:$true] %s28_s14 }
   0x2   :  { %10 = vsyncpa [#allocation4], 0  ;;  %s333_s15 = smov [#allocation5]   ;;  %s15_s19 = sshll.u32 %s387_s0, 4  ;;  %s16_s19 = int_to_ptr.hbm [resolvable:$true] %s15_s19 }
   0x3   :  { %s30_s16 = sshll.u32 %s333_s15, 4  ;;  %s334_s20 = smov 512   ;;  %s31_s16 = int_to_ptr.vmem [resolvable:$true] %s30_s16 }
   0x4   :  { %s335_s21 = smov 32   ;;  %s336_s22 = smov [#allocation2]  }
   0x5   :  { %36 = dma.hbm_to_vmem [thread:$0]  %s29_s14, 2048, %s31_s16, [#allocation6], %s334_s20, %s334_s20, %s335_s21  }
   0x6   :  { %s17_s23 = sshll.u32 %s336_s22, 4  ;;  %s337_s24 = smov 128   ;;  %s18_s23 = int_to_ptr.vmem [resolvable:$true] %s17_s23 }
   0x7   :  { %s338_s25 = smov 8   ;;  %s42_s27 = sshll.u32 %s389_s2, 4  ;;  %s43_s27 = int_to_ptr.hbm [resolvable:$true] %s42_s27 }
   0x8   :  { %23 = dma.hbm_to_vmem [thread:$0]  %s16_s19, 256, %s18_s23, [#allocation3], %s337_s24, %s337_s24, %s338_s25  }
   0x9   :  { %s339_s28 = smov [#allocation7]  }
   0xa   :  { %s44_s0 = sshll.u32 %s339_s28, 4  ;;  %s45_s0 = int_to_ptr.vmem [resolvable:$true] %s44_s0 }
   0xb   :  { %47 = dma.hbm_to_vmem [thread:$0]  %s43_s27, 64, %s45_s0, [#allocation6]  }
   0xc   :  { %327 = dma.done.wait [#allocation3], 256  }
   0xd   :  { %328 = vsyncadd [#allocation3], 4294967040 }
   0xe   :  { %329 = dma.done.wait [#allocation6], 2112  }
   0xf   :  { %330 = vsyncadd [#allocation6], 4294965184  ;;  %v76_v0 = vld [vmem:[#allocation5 + $0x70] sm:$0xff]  ;;  %v77_v2 = vld [vmem:[#allocation5 + $0x78] sm:$0xff]  ;;  %vm88_vm0 = vcmask 261120   ;;  %s340_s2 = smov [#allocation8]  }
  0x10   :  { %v72_v1 = vld [vmem:[#allocation5 + $0x50] sm:$0xff]  ;;  %153 = vmatpush.msra.mxu2 %v76_v0  ;;  %176 = vmatpush.msra.mxu3 %v77_v2  ;;  %v74_v3 = vld [vmem:[#allocation5 + $0x60] sm:$0xff]  ;;  %v75_v4 = vld [vmem:[#allocation5 + $0x68] sm:$0xff]  ;;  %s199_s29 = sshll.u32 %s340_s2, 4  ;;  %s201_s5 = sshll.u32 %s390_s3, 4  ;;  %s200_s29 = int_to_ptr.vmem [resolvable:$true] %s199_s29  ;;  %s202_s5 = int_to_ptr.hbm [resolvable:$true] %s201_s5 }
  0x11   :  { %v68_v5 = vld [vmem:[#allocation5 + $0x30] sm:$0xff]  ;;  %107 = vmatpush.msra.mxu0 %v74_v3  ;;  %130 = vmatpush.msra.mxu1 %v75_v4  ;;  %v73_v6 = vld [vmem:[#allocation5 + $0x58] sm:$0xff]  ;;  %v70_v7 = vld [vmem:[#allocation5 + $0x40] sm:$0xff] }
  0x12   :  { %v71_v8 = vld [vmem:[#allocation5 + $0x48] sm:$0xff]  ;;  %154 = vmatpush.msra.mxu2 %v72_v1  ;;  %177 = vmatpush.msra.mxu3 %v73_v6  ;;  %v64_v9 = vld [vmem:[#allocation5 + $0x10] sm:$0xff]  ;;  %v69_v10 = vld [vmem:[#allocation5 + $0x38] sm:$0xff] }
  0x13   :  { %108 = vmatpush.msra.mxu0 %v70_v7  ;;  %131 = vmatpush.msra.mxu1 %v71_v8  ;;  %v66_v11 = vld [vmem:[#allocation5 + $0x20] sm:$0xff]  ;;  %v67_v12 = vld [vmem:[#allocation5 + $0x28] sm:$0xff]  ;;  %v65_v13 = vld [vmem:[#allocation5 + $0x18] sm:$0xff] }
  0x14   :  { %155 = vmatpush.msra.mxu2 %v68_v5  ;;  %178 = vmatpush.msra.mxu3 %v69_v10  ;;  %v60_v14 = vld [vmem:[#allocation2] sm:$0xff]  ;;  %v62_v15 = vld [vmem:[#allocation5] sm:$0xff]  ;;  %v63_v16 = vld [vmem:[#allocation5 + $0x8] sm:$0xff] }
  0x15   :  { %109 = vmatpush.msra.mxu0 %v66_v11  ;;  %132 = vmatpush.msra.mxu1 %v67_v12  ;;  %v61_v17 = vld [vmem:[#allocation2 + $0x8] sm:$0xff]  ;;  %v78_v18 = vld [vmem:[#allocation7] sm:$0xf] }
  0x16   :  { %156 = vmatpush.msra.mxu2 %v64_v9  ;;  %179 = vmatpush.msra.mxu3 %v65_v13  ;;  %v80_v19 = vperm.slane %v78_v18, 0  ;;  %v81_v20 = vperm.slane %v78_v18, 1  ;;  %v82_v25 = vperm.slane %v78_v18, 2  ;;  %v83_v26 = vperm.slane %v78_v18, 3 }
  0x17   :  { %219 = vmatmul.msk.f32.vlgmr.msra.gmra.mxu2 %vm88_vm0, %v60_v14  ;;  %221 = vmatmul.msk.f32.vlgmr.msra.gmra.mxu3 %vm88_vm0, %v60_v14 }
  0x18   :  { %110 = vmatpush.msra.mxu0 %v62_v15  ;;  %133 = vmatpush.msra.mxu1 %v63_v16 }
  0x19   :  { %215 = vmatmul.msk.f32.vlgmr.msra.gmra.mxu0 %vm88_vm0, %v60_v14  ;;  %217 = vmatmul.msk.f32.vlgmr.msra.gmra.mxu1 %vm88_vm0, %v60_v14 }
  0x1f   :  { %220 = vmatmul.msk.f32.gmra.mxu2 %vm88_vm0, %v61_v17  ;;  %222 = vmatmul.msk.f32.gmra.mxu3 %vm88_vm0, %v61_v17 }
  0x21   :  { %216 = vmatmul.msk.f32.gmra.mxu0 %vm88_vm0, %v61_v17  ;;  %218 = vmatmul.msk.f32.gmra.mxu1 %vm88_vm0, %v61_v17 }
  0x96   :  { %v112_v21 = vpop.f32.mrf.mxu0  ;;  %v135_v22 = vpop.f32.mrf.mxu1 }
  0x97   :  { %v113_v23 = vadd.f32 %v112_v21, %v80_v19  ;;  %v136_v24 = vadd.f32 %v135_v22, %v81_v20 }
  0x99   :  { %v187_v27 = vmax.f32 %v113_v23, %v136_v24 }
  0x9a   :  { %v158_v28 = vpop.f32.mrf.mxu2  ;;  %v181_v29 = vpop.f32.mrf.mxu3 }
  0x9b   :  { %v159_v30 = vadd.f32 %v158_v28, %v82_v25  ;;  %v182_v31 = vadd.f32 %v181_v29, %v83_v26 }
  0x9d   :  { %v189_v32 = vmax.f32 %v187_v27, %v159_v30 }
  0x9e   :  { %v115_v33 = vpop.f32.mrf.mxu0  ;;  %v138_v34 = vpop.f32.mrf.mxu1 }
  0x9f   :  { %v191_v35 = vmax.f32 %v189_v32, %v182_v31  ;;  %v116_v36 = vadd.f32 %v115_v33, %v80_v19  ;;  %v139_v37 = vadd.f32 %v138_v34, %v81_v20 }
  0xa1   :  { %193 = vst [vmem:[#allocation8] sm:$0xff] %v191_v35  ;;  %v188_v38 = vmax.f32 %v116_v36, %v139_v37 }
  0xa2   :  { %v161_v39 = vpop.f32.mrf.mxu2  ;;  %v184_v40 = vpop.f32.mrf.mxu3 }
  0xa3   :  { %v162_v41 = vadd.f32 %v161_v39, %v82_v25  ;;  %v185_v42 = vadd.f32 %v184_v40, %v83_v26 }
  0xa5   :  { %v190_v43 = vmax.f32 %v188_v38, %v162_v41 }
  0xa7   :  { %v192_v44 = vmax.f32 %v190_v43, %v185_v42 }
  0xa9   :  { %194 = vst [vmem:[#allocation8 + $0x8] sm:$0xff] %v192_v44 }
  0xaa   :  { %207 = dma.vmem_to_hbm [thread:$0]  %s200_s29, 256, %s202_s5, [#allocation4], %s337_s24, %s337_s24, %s338_s25  }
  0xab   :  { %331 = dma.done.wait [#allocation4], 256  }
  0xac   :  { %332 = vsyncadd [#allocation4], 4294967040 }
  0xad   :  { %212 = vsyncpa [#allocation3], 1 }
  0xae   :  { %213 = vsyncpa [#allocation6], 1 }
  0xaf   :  { %214 = vsyncpa [#allocation4], 1 }

</bundles_post_ra>
